<compile_context>
chip_gen: v5e
topology: v5e:2x2
jax: 0.10.0
libtpu: 0.0.40
codegen_flags: <defaults>
</compile_context>

<pallas_src>
import functools

import jax
import jax.numpy as jnp
from jax.experimental import pallas as pl
from jax.experimental.pallas import tpu as pltpu


def _round_up(x, m):
    return (x + m - 1) // m * m


def _pick_tile(dim, align, cap):
    """Tile that is a multiple of `align`, close to `cap`, with minimal padding.

    Returns (tile, n_blocks, padded_dim)."""
    padded = _round_up(max(dim, 1), align)
    n_blocks = pl.cdiv(padded, cap)
    tile = _round_up(pl.cdiv(padded, n_blocks), align)
    return tile, n_blocks, n_blocks * tile


def _noisy_linear_kernel(x_ref, xf_ref, mu_w_ref, sigma_w_ref, b_ref, f_out_ref,
                         o_ref, acc_mu_ref, acc_sig_ref, *, precision):
    """One (tm, tn) output tile, accumulated over the K (= In) grid axis.

    x_ref      : (tm, tk)  input slice (compute dtype)
    xf_ref     : (tm, tk)  x * f(eps_in) slice (precomputed in wrapper)
    mu_w_ref   : (tn, tk)  mu_w tile, kept (Out, In) -> contracted on In (no transpose)
    sigma_w_ref: (tn, tk)  sigma_w tile
    b_ref      : (1, tn)   noisy bias (f32, precomputed in wrapper)
    f_out_ref  : (1, tn)   f(eps_out) (f32)
    """
    k = pl.program_id(2)

    @pl.when(k == 0)
    def _():
        acc_mu_ref[...] = jnp.zeros_like(acc_mu_ref)
        acc_sig_ref[...] = jnp.zeros_like(acc_sig_ref)

    # Contract the In axis of x / xf against the In axis of the (Out, In) weight
    # tiles so the MXU consumes W^T directly.
    dn = (((1,), (1,)), ((), ()))
    acc_mu_ref[...] += jax.lax.dot_general(
        x_ref[...], mu_w_ref[...], dn,
        precision=precision, preferred_element_type=jnp.float32)
    acc_sig_ref[...] += jax.lax.dot_general(
        xf_ref[...], sigma_w_ref[...], dn,
        precision=precision, preferred_element_type=jnp.float32)

    @pl.when(k == pl.num_programs(2) - 1)
    def _():
        # f_out scaling + bias-add happen once per output tile, in f32.
        out = acc_mu_ref[...] + f_out_ref[...] * acc_sig_ref[...] + b_ref[...]
        o_ref[...] = out.astype(o_ref.dtype)


def noisy_linear(x, mu_w, sigma_w, mu_b, sigma_b, eps_in, eps_out, *,
                 compute_dtype=jnp.bfloat16, precision=None):
    """Forward pass of NoisyLinear.

    x: (B, In); mu_w/sigma_w: (Out, In); mu_b/sigma_b/eps_out: (Out,); eps_in: (In,).
    Returns (B, Out) in x.dtype, matching
      F.linear(x, mu_w + sigma_w * (f(eps_out) ⊗ f(eps_in)), mu_b + sigma_b * f(eps_out))
    via the factorized algebra
      x @ W_noisy^T = x @ mu_w^T + f(eps_out) * ((x * f(eps_in)) @ sigma_w^T).
    compute_dtype controls matmul operand dtype (default bf16, f32 accumulation).
    """
    B, In = x.shape
    Out, In_w = mu_w.shape
    assert In_w == In
    out_dtype = x.dtype

    x = x.astype(jnp.float32)
    # f(v) = sign(v) * sqrt(|v|); tiny vectors, hoisted out of the kernel's K loop.
    f = lambda v: jnp.sign(v) * jnp.sqrt(jnp.abs(v))
    f_in = f(eps_in.astype(jnp.float32)).reshape(1, In)
    f_out = f(eps_out.astype(jnp.float32)).reshape(1, Out)
    bias = (mu_b.astype(jnp.float32)
            + sigma_b.astype(jnp.float32) * f_out[0]).reshape(1, Out)   # f32 bias
    xf = x * f_in                                                        # f32, then one cast

    cdtype = jnp.dtype(compute_dtype) if compute_dtype is not None else jnp.dtype(jnp.float32)
    comp_bytes = cdtype.itemsize
    if precision is None:
        # bf16 operands: single MXU pass (DEFAULT). f32 operands: HIGH (3-pass),
        # not HIGHEST (6-pass). HIGHEST only if explicitly requested.
        precision = (jax.lax.Precision.DEFAULT if comp_bytes < 4
                     else jax.lax.Precision.HIGH)

    x_c = x.astype(cdtype)
    xf_c = xf.astype(cdtype)
    mu_w_c = mu_w.astype(cdtype)
    sigma_w_c = sigma_w.astype(cdtype)

    # ---- tile / grid selection --------------------------------------------
    m_align = 16 if comp_bytes < 4 else 8          # bf16 packs 2 rows / sublane
    if comp_bytes < 4:
        m_cap, n_cap, k_cap = 512, 1024, 1024      # ~20 MiB double-buffered (v7x safe)
    else:
        m_cap, n_cap, k_cap = 256, 512, 512        # ~10 MiB for the f32 fallback path

    tm, m_blocks, Bp = _pick_tile(B, m_align, m_cap)
    tn, n_blocks, Outp = _pick_tile(Out, 128, n_cap)
    tk, k_blocks, Inp = _pick_tile(In, 128, k_cap)

    # v7x has 2 TensorCores; make sure some "parallel" axis has >= 2 iterations
    # when it can be done with no extra padding.
    if m_blocks == 1 and n_blocks == 1 and Outp >= 256 and (Outp // 128) % 2 == 0:
        tn = Outp // 2
        n_blocks = 2

    def pad2(a, rows, cols):
        pr, pc = rows - a.shape[0], cols - a.shape[1]
        if pr == 0 and pc == 0:
            return a
        return jnp.pad(a, ((0, pr), (0, pc)))

    xp = pad2(x_c, Bp, Inp)
    xfp = pad2(xf_c, Bp, Inp)
    mu_wp = pad2(mu_w_c, Outp, Inp)
    sigma_wp = pad2(sigma_w_c, Outp, Inp)
    biasp = pad2(bias, 1, Outp)        # f32
    f_outp = pad2(f_out, 1, Outp)      # f32

    grid = (m_blocks, n_blocks, k_blocks)
    out_bytes = jnp.dtype(out_dtype).itemsize

    # Explicit VMEM budget (double-buffered inputs/output + 2 f32 accumulators).
    vmem_est = (2 * (2 * tm * tk * comp_bytes        # x + xf
                     + 2 * tn * tk * comp_bytes      # mu_w + sigma_w
                     + 2 * tn * 4)                   # bias + f_out
                + 2 * tm * tn * out_bytes            # output tile
                + 2 * tm * tn * 4)                   # acc_mu + acc_sig
    vmem_limit = int(min(56 << 20, max(32 << 20, vmem_est + (8 << 20))))

    cost = pl.CostEstimate(
        flops=4 * Bp * Inp * Outp,   # two (tm,tk)x(tk,tn) matmuls per output tile
        transcendentals=0,
        bytes_accessed=int(m_blocks * 2 * Outp * Inp * comp_bytes   # weights re-streamed / batch tile
                           + n_blocks * 2 * Bp * Inp * comp_bytes   # x + xf re-streamed / out tile
                           + Bp * Outp * out_bytes),
    )

    kernel = functools.partial(_noisy_linear_kernel, precision=precision)

    out_p = pl.pallas_call(
        kernel,
        out_shape=jax.ShapeDtypeStruct((Bp, Outp), out_dtype),
        grid_spec=pltpu.PrefetchScalarGridSpec(
            num_scalar_prefetch=0,
            grid=grid,
            in_specs=[
                pl.BlockSpec((tm, tk), lambda i, j, k: (i, k)),    # x
                pl.BlockSpec((tm, tk), lambda i, j, k: (i, k)),    # x * f(eps_in)
                pl.BlockSpec((tn, tk), lambda i, j, k: (j, k)),    # mu_w    (Out, In)
                pl.BlockSpec((tn, tk), lambda i, j, k: (j, k)),    # sigma_w (Out, In)
                pl.BlockSpec((1, tn), lambda i, j, k: (0, j)),     # noisy bias (f32, DMA only on j change)
                pl.BlockSpec((1, tn), lambda i, j, k: (0, j)),     # f(eps_out) (f32)
            ],
            out_specs=pl.BlockSpec((tm, tn), lambda i, j, k: (i, j)),
            scratch_shapes=[pltpu.VMEM((tm, tn), jnp.float32),     # acc_mu
                            pltpu.VMEM((tm, tn), jnp.float32)],    # acc_sig
        ),
        compiler_params=pltpu.CompilerParams(
            dimension_semantics=("parallel", "parallel", "arbitrary"),
            vmem_limit_bytes=vmem_limit),
        cost_estimate=cost,
    )(xp, xfp, mu_wp, sigma_wp, biasp, f_outp)

    return out_p[:B, :Out]


def init_noisy_linear_params(key, in_features, out_features):
    """Deterministic re-implementation of NoisyLinear.__init__ param init."""
    k_mu_w, k_mu_b, k_eps_in, k_eps_out = jax.random.split(key, 4)
    bound = 1.0 / jnp.sqrt(jnp.float32(in_features))
    sigma_0 = 0.5
    constant = sigma_0 / jnp.sqrt(jnp.float32(in_features))

    mu_w = jax.random.uniform(k_mu_w, (out_features, in_features),
                              jnp.float32, -bound, bound)
    mu_b = jax.random.uniform(k_mu_b, (out_features,),
                              jnp.float32, -bound, bound)
    sigma_w = jnp.full((out_features, in_features), constant, jnp.float32)
    sigma_b = jnp.full((out_features,), constant, jnp.float32)
    # sample_epsilon(): standard-normal factorized noise
    eps_in = jax.random.normal(k_eps_in, (in_features,), jnp.float32)
    eps_out = jax.random.normal(k_eps_out, (out_features,), jnp.float32)
    return mu_w, sigma_w, mu_b, sigma_b, eps_in, eps_out


def _reference(x, mu_w, sigma_w, mu_b, sigma_b, eps_in, eps_out):
    f = lambda v: jnp.sign(v) * jnp.sqrt(jnp.abs(v))
    eps_b = f(eps_out)
    eps_w = eps_b[:, None] * f(eps_in)[None, :]
    w = mu_w + sigma_w * eps_w
    b = mu_b + sigma_b * eps_b
    return jnp.dot(x, w.T, precision=jax.lax.Precision.HIGHEST) + b


if __name__ == "__main__":
    key = jax.random.PRNGKey(0)

    # Test 1: default (bf16 compute) path, small shapes -> single-tile grid.
    k_params, k_x, key = jax.random.split(key, 3)
    batch, in_features, out_features = 8, 32, 64
    params = init_noisy_linear_params(k_params, in_features, out_features)
    x = jax.random.normal(k_x, (batch, in_features), jnp.float32)
    out = jax.block_until_ready(noisy_linear(x, *params))
    ref = _reference(x, *params)
    assert out.shape == (batch, out_features) and out.dtype == x.dtype
    assert jnp.allclose(out, ref, atol=5e-2, rtol=5e-2), "bf16 small-shape mismatch"

    # Test 2: exact f32 path (explicit HIGHEST), multi-tile K accumulation +
    # split Out axis (two parallel N blocks).
    k_params2, k_x2, key = jax.random.split(key, 3)
    batch2, in2, out2 = 16, 1024, 256
    params2 = init_noisy_linear_params(k_params2, in2, out2)
    x2 = jax.random.normal(k_x2, (batch2, in2), jnp.float32)
    out_f32 = jax.block_until_ready(
        noisy_linear(x2, *params2, compute_dtype=None,
                     precision=jax.lax.Precision.HIGHEST))
    ref2 = _reference(x2, *params2)
    assert out_f32.shape == (batch2, out2)
    assert jnp.allclose(out_f32, ref2, atol=1e-4, rtol=1e-4), "f32 tiled mismatch"

    # Test 3: default bf16 path at the same tiled shapes (loose tolerance vs f32 ref).
    out_bf16 = jax.block_until_ready(noisy_linear(x2, *params2))
    assert jnp.allclose(out_bf16, ref2, atol=5e-2, rtol=5e-2), "bf16 tiled mismatch"

    print("KERNEL_OK")
</pallas_src>

<mosaic_0001>
module attributes {stable_mosaic.version = 11 : i64} {
  func.func @_noisy_linear_kernel(%arg0: i32, %arg1: i32, %arg2: i32, %arg3: memref<16x128xbf16, #tpu.memory_space<vmem>>, %arg4: memref<16x128xbf16, #tpu.memory_space<vmem>>, %arg5: memref<128x128xbf16, #tpu.memory_space<vmem>>, %arg6: memref<128x128xbf16, #tpu.memory_space<vmem>>, %arg7: memref<1x128xf32, #tpu.memory_space<vmem>>, %arg8: memref<1x128xf32, #tpu.memory_space<vmem>>, %arg9: memref<16x128xf32, #tpu.memory_space<vmem>>, %arg10: memref<16x128xf32, #tpu.memory_space<vmem>>, %arg11: memref<16x128xf32, #tpu.memory_space<vmem>>) attributes {dimension_semantics = [#tpu.dimension_semantics<parallel>, #tpu.dimension_semantics<parallel>, #tpu.dimension_semantics<arbitrary>], iteration_bounds = array<i64: 1, 1, 1>, scalar_prefetch = 0 : i64, scratch_operands = 2 : i64, tpu.core_type = #tpu.core_type<tc>, window_params = [{transform_indices = @transform_0, window_bounds = array<i64: 16, 128>}, {transform_indices = @transform_1, window_bounds = array<i64: 16, 128>}, {transform_indices = @transform_2, window_bounds = array<i64: 128, 128>}, {transform_indices = @transform_3, window_bounds = array<i64: 128, 128>}, {transform_indices = @transform_4, window_bounds = array<i64: 1, 128>}, {transform_indices = @transform_5, window_bounds = array<i64: 1, 128>}, {transform_indices = @transform_6, window_bounds = array<i64: 16, 128>}]} {
    %c0_i32 = arith.constant 0 : i32
    %0 = arith.cmpi eq, %arg2, %c0_i32 : i32
    %1 = arith.extui %0 : i1 to i32
    %c0_i32_0 = arith.constant 0 : i32
    %2 = arith.cmpi ne, %1, %c0_i32_0 : i32
    scf.if %2 {
      %cst_19 = arith.constant 0.000000e+00 : f32
      %18 = vector.broadcast %cst_19 : f32 to vector<16x128xf32>
      %c0_20 = arith.constant 0 : index
      %c0_21 = arith.constant 0 : index
      %19 = vector.load %arg10[%c0_20, %c0_21] : memref<16x128xf32, #tpu.memory_space<vmem>>, vector<16x128xf32>
      tpu.vector_store %arg10[%c0_20, %c0_21], %18 {strides = array<i32>} : memref<16x128xf32, #tpu.memory_space<vmem>>, vector<16x128xf32>,
      %cst_22 = arith.constant 0.000000e+00 : f32
      %20 = vector.broadcast %cst_22 : f32 to vector<16x128xf32>
      %c0_23 = arith.constant 0 : index
      %c0_24 = arith.constant 0 : index
      %21 = vector.load %arg11[%c0_23, %c0_24] : memref<16x128xf32, #tpu.memory_space<vmem>>, vector<16x128xf32>
      tpu.vector_store %arg11[%c0_23, %c0_24], %20 {strides = array<i32>} : memref<16x128xf32, #tpu.memory_space<vmem>>, vector<16x128xf32>,
    } else {
    }
    %c0 = arith.constant 0 : index
    %c0_1 = arith.constant 0 : index
    %3 = vector.load %arg10[%c0, %c0_1] : memref<16x128xf32, #tpu.memory_space<vmem>>, vector<16x128xf32>
    %c0_2 = arith.constant 0 : index
    %c0_3 = arith.constant 0 : index
    %4 = vector.load %arg3[%c0_2, %c0_3] : memref<16x128xbf16, #tpu.memory_space<vmem>>, vector<16x128xbf16>
    %c0_4 = arith.constant 0 : index
    %c0_5 = arith.constant 0 : index
    %5 = vector.load %arg5[%c0_4, %c0_5] : memref<128x128xbf16, #tpu.memory_space<vmem>>, vector<128x128xbf16>
    %cst = arith.constant dense<0.000000e+00> : vector<16x128xf32>
    %6 = tpu.matmul %4, %5, %cst {dimension_numbers = #tpu.dot_dimension_numbers<[1], [1], [0], [0], [0, 0, 1, 0], [], []>} : vector<16x128xbf16>, vector<128x128xbf16>, vector<16x128xf32> -> vector<16x128xf32>
    %7 = arith.addf %3, %6 : vector<16x128xf32>
    %c0_6 = arith.constant 0 : index
    %c0_7 = arith.constant 0 : index
    %8 = vector.load %arg10[%c0_6, %c0_7] : memref<16x128xf32, #tpu.memory_space<vmem>>, vector<16x128xf32>
    tpu.vector_store %arg10[%c0_6, %c0_7], %7 {strides = array<i32>} : memref<16x128xf32, #tpu.memory_space<vmem>>, vector<16x128xf32>,
    %c0_8 = arith.constant 0 : index
    %c0_9 = arith.constant 0 : index
    %9 = vector.load %arg11[%c0_8, %c0_9] : memref<16x128xf32, #tpu.memory_space<vmem>>, vector<16x128xf32>
    %c0_10 = arith.constant 0 : index
    %c0_11 = arith.constant 0 : index
    %10 = vector.load %arg4[%c0_10, %c0_11] : memref<16x128xbf16, #tpu.memory_space<vmem>>, vector<16x128xbf16>
    %c0_12 = arith.constant 0 : index
    %c0_13 = arith.constant 0 : index
    %11 = vector.load %arg6[%c0_12, %c0_13] : memref<128x128xbf16, #tpu.memory_space<vmem>>, vector<128x128xbf16>
    %cst_14 = arith.constant dense<0.000000e+00> : vector<16x128xf32>
    %12 = tpu.matmul %10, %11, %cst_14 {dimension_numbers = #tpu.dot_dimension_numbers<[1], [1], [0], [0], [0, 0, 1, 0], [], []>} : vector<16x128xbf16>, vector<128x128xbf16>, vector<16x128xf32> -> vector<16x128xf32>
    %13 = arith.addf %9, %12 : vector<16x128xf32>
    %c0_15 = arith.constant 0 : index
    %c0_16 = arith.constant 0 : index
    %14 = vector.load %arg11[%c0_15, %c0_16] : memref<16x128xf32, #tpu.memory_space<vmem>>, vector<16x128xf32>
    tpu.vector_store %arg11[%c0_15, %c0_16], %13 {strides = array<i32>} : memref<16x128xf32, #tpu.memory_space<vmem>>, vector<16x128xf32>,
    %c0_i32_17 = arith.constant 0 : i32
    %15 = arith.cmpi eq, %arg2, %c0_i32_17 : i32
    %16 = arith.extui %15 : i1 to i32
    %c0_i32_18 = arith.constant 0 : i32
    %17 = arith.cmpi ne, %16, %c0_i32_18 : i32
    scf.if %17 {
      %c0_19 = arith.constant 0 : index
      %c0_20 = arith.constant 0 : index
      %18 = vector.load %arg10[%c0_19, %c0_20] : memref<16x128xf32, #tpu.memory_space<vmem>>, vector<16x128xf32>
      %c0_21 = arith.constant 0 : index
      %c0_22 = arith.constant 0 : index
      %19 = vector.load %arg8[%c0_21, %c0_22] : memref<1x128xf32, #tpu.memory_space<vmem>>, vector<1x128xf32>
      %c0_23 = arith.constant 0 : index
      %c0_24 = arith.constant 0 : index
      %20 = vector.load %arg11[%c0_23, %c0_24] : memref<16x128xf32, #tpu.memory_space<vmem>>, vector<16x128xf32>
      %21 = vector.broadcast %19 : vector<1x128xf32> to vector<16x128xf32>
      %22 = arith.mulf %21, %20 : vector<16x128xf32>
      %23 = arith.addf %18, %22 : vector<16x128xf32>
      %c0_25 = arith.constant 0 : index
      %c0_26 = arith.constant 0 : index
      %24 = vector.load %arg7[%c0_25, %c0_26] : memref<1x128xf32, #tpu.memory_space<vmem>>, vector<1x128xf32>
      %25 = vector.broadcast %24 : vector<1x128xf32> to vector<16x128xf32>
      %26 = arith.addf %23, %25 : vector<16x128xf32>
      %c0_27 = arith.constant 0 : index
      %c0_28 = arith.constant 0 : index
      %27 = vector.load %arg9[%c0_27, %c0_28] : memref<16x128xf32, #tpu.memory_space<vmem>>, vector<16x128xf32>
      tpu.vector_store %arg9[%c0_27, %c0_28], %26 {strides = array<i32>} : memref<16x128xf32, #tpu.memory_space<vmem>>, vector<16x128xf32>,
    } else {
    }
    return
  }
  func.func @transform_0(%arg0: i32, %arg1: i32, %arg2: i32) -> (i32, i32) {
    %c0_i32 = arith.constant 0 : i32
    return %arg0, %arg2 : i32, i32
  }
  func.func @transform_1(%arg0: i32, %arg1: i32, %arg2: i32) -> (i32, i32) {
    %c0_i32 = arith.constant 0 : i32
    return %arg0, %arg2 : i32, i32
  }
  func.func @transform_2(%arg0: i32, %arg1: i32, %arg2: i32) -> (i32, i32) {
    %c0_i32 = arith.constant 0 : i32
    return %arg1, %arg2 : i32, i32
  }
  func.func @transform_3(%arg0: i32, %arg1: i32, %arg2: i32) -> (i32, i32) {
    %c0_i32 = arith.constant 0 : i32
    return %arg1, %arg2 : i32, i32
  }
  func.func @transform_4(%arg0: i32, %arg1: i32, %arg2: i32) -> (i32, i32) {
    %c0_i32 = arith.constant 0 : i32
    %c0_i32_0 = arith.constant 0 : i32
    return %c0_i32, %arg1 : i32, i32
  }
  func.func @transform_5(%arg0: i32, %arg1: i32, %arg2: i32) -> (i32, i32) {
    %c0_i32 = arith.constant 0 : i32
    %c0_i32_0 = arith.constant 0 : i32
    return %c0_i32, %arg1 : i32, i32
  }
  func.func @transform_6(%arg0: i32, %arg1: i32, %arg2: i32) -> (i32, i32) {
    %c0_i32 = arith.constant 0 : i32
    return %arg0, %arg1 : i32, i32
  }
}

</mosaic_0001>

<bundles_post_ra>
// kernel: tpu_custom_call.1
= control target key start
LH: loop header
LB: loop body
LE: loop exit
PB: predicated region body
PF: predicated region fallthrough
CT: control target
= control target key end

     0   :  { %11 = vsyncpa [#allocation5], 0  ;;  %s617_s0 = inlined_call_operand.hbm [shape: bf16[16,128], index: 0, kind: input, shape index: {}]   ;;  %s618_s1 = inlined_call_operand.hbm [shape: bf16[16,128], index: 1, kind: input, shape index: {}]   ;;  %s619_s2 = inlined_call_operand.hbm [shape: bf16[128,128], index: 2, kind: input, shape index: {}]   ;;  %s620_s3 = inlined_call_operand.hbm [shape: bf16[128,128], index: 3, kind: input, shape index: {}]   ;;  %s621_s4 = inlined_call_operand.vmem [shape: f32[1,128], index: 4, kind: input, shape index: {}]   ;;  %s622_s5 = inlined_call_operand.vmem [shape: f32[1,128], index: 5, kind: input, shape index: {}]   ;;  %s623_s6 = inlined_call_operand.hbm [shape: f32[16,128], index: 6, kind: output, shape index: {}]  }
   0x1   :  { %12 = vsyncpa [#allocation8], 0 }
   0x2   :  { %13 = vsyncpa [#allocation11], 0 }
   0x3   :  { %14 = vsyncpa [#allocation6], 0  ;;  %s32_s23 = sshll.u32 %s618_s1, 4  ;;  %s552_s24 = smov [#allocation7]   ;;  %s33_s23 = int_to_ptr.hbm [resolvable:$true] %s32_s23 }
   0x4   :  { %s34_s25 = sshll.u32 %s552_s24, 4  ;;  %s19_s28 = sshll.u32 %s617_s0, 4  ;;  %s35_s25 = int_to_ptr.vmem [resolvable:$true] %s34_s25  ;;  %s20_s28 = int_to_ptr.hbm [resolvable:$true] %s19_s28 }
   0x5   :  { %s553_s29 = smov 64   ;;  %s554_s30 = smov 4  }
   0x6   :  { %40 = dma.hbm_to_vmem [thread:$0]  %s33_s23, 128, %s35_s25, [#allocation8], %s553_s29, %s553_s29, %s554_s30  }
   0x7   :  { %s555_s7 = smov [#allocation4]   ;;  %s45_s11 = sshll.u32 %s619_s2, 4  ;;  %s46_s11 = int_to_ptr.hbm [resolvable:$true] %s45_s11 }
   0x8   :  { %s21_s8 = sshll.u32 %s555_s7, 4  ;;  %s58_s13 = sshll.u32 %s620_s3, 4  ;;  %s22_s8 = int_to_ptr.vmem [resolvable:$true] %s21_s8  ;;  %s59_s13 = int_to_ptr.hbm [resolvable:$true] %s58_s13 }
   0x9   :  { %27 = dma.hbm_to_vmem [thread:$0]  %s20_s28, 128, %s22_s8, [#allocation5], %s553_s29, %s553_s29, %s554_s30  }
   0xa   :  { %s556_s14 = smov [#allocation9]   ;;  %s557_s0 = smov [#allocation10]  }
   0xb   :  { %s47_s15 = sshll.u32 %s556_s14, 4  ;;  %s60_s16 = sshll.u32 %s557_s0, 4  ;;  %s48_s15 = int_to_ptr.vmem [resolvable:$true] %s47_s15  ;;  %s61_s16 = int_to_ptr.vmem [resolvable:$true] %s60_s16 }
   0xc   :  { %53 = dma.hbm_to_vmem [thread:$0]  %s46_s11, 1024, %s48_s15, [#allocation8], %s553_s29, %s553_s29, %s554_s30  }
   0xd   :  { %66 = dma.hbm_to_vmem [thread:$0]  %s59_s13, 1024, %s61_s16, [#allocation11], %s553_s29, %s553_s29, %s554_s30  }
   0xe   :  { %544 = dma.done.wait [#allocation5], 128  }
   0xf   :  { %545 = vsyncadd [#allocation5], 4294967168 }
  0x10   :  { %546 = dma.done.wait [#allocation8], 1152  }
  0x11   :  { %547 = vsyncadd [#allocation8], 4294966144 }
  0x12   :  { %548 = dma.done.wait [#allocation11], 1024  }
  0x13   :  { %549 = vsyncadd [#allocation11], 4294966272  ;;  %v403_v0 = vld [vmem:[#allocation9 + $0x38] sm:$0xff]  ;;  %v402_v2 = vld [vmem:[#allocation9 + $0x30] sm:$0xff]  ;;  %s558_s19 = smov [#allocation12]   ;;  %s308_s23 = sshll.u32 %s623_s6, 4  ;;  %s309_s23 = int_to_ptr.hbm [resolvable:$true] %s308_s23 }
  0x14   :  { %v412_v1 = vld [vmem:[#allocation10 + $0x38] sm:$0xff]  ;;  %169 = vmatpush.bf16.xpose.msra.mxu0 %v403_v0  ;;  %v411_v3 = vld [vmem:[#allocation10 + $0x30] sm:$0xff]  ;;  %v401_v4 = vld [vmem:[#allocation9 + $0x28] sm:$0xff]  ;;  %s306_s20 = sshll.u32 %s558_s19, 4  ;;  %s560_s24 = smov 8   ;;  %s307_s20 = int_to_ptr.vmem [resolvable:$true] %s306_s20 }
  0x15   :  { %261 = vmatpush.bf16.xpose.msra.mxu1 %v412_v1  ;;  %v410_v5 = vld [vmem:[#allocation10 + $0x28] sm:$0xff]  ;;  %v400_v6 = vld [vmem:[#allocation9 + $0x20] sm:$0xff]  ;;  %v399_v8 = vld [vmem:[#allocation9 + $0x18] sm:$0xff] }
  0x16   :  { %v409_v7 = vld [vmem:[#allocation10 + $0x20] sm:$0xff]  ;;  %v408_v9 = vld [vmem:[#allocation10 + $0x18] sm:$0xff]  ;;  %v398_v10 = vld [vmem:[#allocation9 + $0x10] sm:$0xff] }
  0x17   :  { %v407_v11 = vld [vmem:[#allocation10 + $0x10] sm:$0xff]  ;;  %v397_v12 = vld [vmem:[#allocation9 + $0x8] sm:$0xff]  ;;  %v396_v14 = vld [vmem:[#allocation9] sm:$0xff] }
  0x18   :  { %v406_v13 = vld [vmem:[#allocation10 + $0x8] sm:$0xff]  ;;  %v405_v15 = vld [vmem:[#allocation10] sm:$0xff]  ;;  %v395_v16 = vld [vmem:[#allocation4] sm:$0xff] }
  0x19   :  { %v404_v17 = vld [vmem:[#allocation7] sm:$0xff]  ;;  %v422_v18 = vld [vmem:[%s622_s5] ss:$0 sm:$0xff]  ;;  %s559_s5 = smov 128  }
  0x1a   :  { %v423_v22 = vld [vmem:[%s621_s4] ss:$0 sm:$0xff] }
  0x1c   :  { %170 = vmatpush.bf16.xpose.msra.mxu0 %v402_v2 }
  0x1d   :  { %262 = vmatpush.bf16.xpose.msra.mxu1 %v411_v3 }
  0x24   :  { %171 = vmatpush.bf16.xpose.msra.mxu0 %v401_v4 }
  0x25   :  { %263 = vmatpush.bf16.xpose.msra.mxu1 %v410_v5 }
  0x2c   :  { %172 = vmatpush.bf16.xpose.msra.mxu0 %v400_v6 }
  0x2d   :  { %264 = vmatpush.bf16.xpose.msra.mxu1 %v409_v7 }
  0x34   :  { %173 = vmatpush.bf16.xpose.msra.mxu0 %v399_v8 }
  0x35   :  { %265 = vmatpush.bf16.xpose.msra.mxu1 %v408_v9 }
  0x3c   :  { %174 = vmatpush.bf16.xpose.msra.mxu0 %v398_v10 }
  0x3d   :  { %266 = vmatpush.bf16.xpose.msra.mxu1 %v407_v11 }
  0x44   :  { %175 = vmatpush.bf16.xpose.msra.mxu0 %v397_v12 }
  0x45   :  { %267 = vmatpush.bf16.xpose.msra.mxu1 %v406_v13 }
  0x4c   :  { %176 = vmatpush.bf16.xpose.msra.mxu0 %v396_v14 }
  0x4d   :  { %268 = vmatpush.bf16.xpose.msra.mxu1 %v405_v15 }
  0x53   :  { %177 = vmatmul.bf16.vlgmr.msra.gmra.mxu0 %v395_v16 }
  0x54   :  { %269 = vmatmul.bf16.vlgmr.msra.gmra.mxu1 %v404_v17 }
  0xd0   :  { %v178_v19 = vpop.f32.mrf.mxu0 }
  0xd1   :  { %v270_v20 = vpop.f32.mrf.mxu1 }
  0xd2   :  { %v290_v21 = vmul.f32 %v422_v18, %v270_v20 }
  0xd4   :  { %v292_v23 = vadd.f32 %v290_v21, %v178_v19 }
  0xd6   :  { %v298_v24 = vadd.f32 %v423_v22, %v292_v23 }
  0xd8   :  { %300 = vst [vmem:[#allocation12] sm:$0xff] %v298_v24  ;;  %v180_v27 = vpop.f32.mrf.mxu0 }
  0xd9   :  { %v272_v25 = vpop.f32.mrf.mxu1 }
  0xda   :  { %v291_v26 = vmul.f32 %v422_v18, %v272_v25 }
  0xdc   :  { %v293_v28 = vadd.f32 %v291_v26, %v180_v27 }
  0xde   :  { %v299_v29 = vadd.f32 %v423_v22, %v293_v28 }
  0xe0   :  { %301 = vst [vmem:[#allocation12 + $0x8] sm:$0xff] %v299_v29 }
  0xe1   :  { %314 = dma.vmem_to_hbm [thread:$0]  %s307_s20, 256, %s309_s23, [#allocation6], %s559_s5, %s559_s5, %s560_s24  }
  0xe2   :  { %550 = dma.done.wait [#allocation6], 256  }
  0xe3   :  { %551 = vsyncadd [#allocation6], 4294967040 }
  0xe4   :  { %319 = vsyncpa [#allocation5], 1 }
  0xe5   :  { %320 = vsyncpa [#allocation8], 1 }
  0xe6   :  { %321 = vsyncpa [#allocation11], 1 }
  0xe7   :  { %322 = vsyncpa [#allocation6], 1 }

</bundles_post_ra>
